<compile_context>
chip_gen: v6e
topology: v6e:2x2x1
jax: 0.10.0
libtpu: 0.0.40
codegen_flags: <defaults>
</compile_context>

<pallas_src>
import functools

import jax
import jax.numpy as jnp
from jax import lax
from jax.experimental import pallas as pl
from jax.experimental.pallas import tpu as pltpu

_EPS = 1e-8  # F.cosine_similarity default eps


def _pick_vmem_limit_bytes():
    """Generation-aware scoped-VMEM limit: half of physical, capped at 64 MiB."""
    try:
        cap = int(pltpu.get_tpu_info().vmem_capacity_bytes)
    except Exception:
        cap = 64 * 1024 * 1024  # conservative (v7x-sized) fallback
    return min(max(cap // 2, 16 * 1024 * 1024), 64 * 1024 * 1024)


# ----------------------------------------------------------------------------
# Aligned path: n % 128 == 0, dense lane-packed layout [B, C, P, rows_p, 128].
# ----------------------------------------------------------------------------
def _stereo_loss_aligned_kernel(a_ref, b_ref, out_ref, *,
                                num_channels, rows_valid, chunk, need_mask):
    j = pl.program_id(2)
    tr = a_ref.shape[3]

    @pl.when(j == 0)
    def _():
        out_ref[...] = jnp.zeros_like(out_ref)

    num_chunks = tr // chunk
    eps2 = jnp.float32(_EPS * _EPS)

    acc = None
    for i in range(num_chunks):                     # static, fully unrolled
        r0 = i * chunk
        a0 = a_ref[0, 0, 0, r0:r0 + chunk, :].astype(jnp.float32)
        b0 = b_ref[0, 0, 0, r0:r0 + chunk, :].astype(jnp.float32)
        dot = a0 * b0
        sa = a0 * a0
        sb = b0 * b0
        for c in range(1, num_channels):            # unrolled channel reduce (VPU)
            ac = a_ref[0, c, 0, r0:r0 + chunk, :].astype(jnp.float32)
            bc = b_ref[0, c, 0, r0:r0 + chunk, :].astype(jnp.float32)
            dot = dot + ac * bc
            sa = sa + ac * ac
            sb = sb + bc * bc
        # cos = dot / max(|a|*|b|, eps) == dot * rsqrt(max(|a|^2*|b|^2, eps^2))
        inv = lax.rsqrt(jnp.maximum(sa * sb, eps2))
        loss = 0.5 - 0.5 * (dot * inv)              # (chunk, 128)
        if need_mask:
            # Only whole 128-lane rows can be invalid here (n % 128 == 0).
            row = j * tr + r0 + lax.broadcasted_iota(jnp.int32, loss.shape, 0)
            loss = jnp.where(row < rows_valid, loss, 0.0)
        acc = loss if acc is None else acc + loss   # stays in vregs

    # Fold (chunk, 128) -> (8, 128) with vreg-aligned adds, accumulate into the
    # resident output block (one tiny RMW per grid step).
    if chunk >= 8:
        folded = acc[0:8, :]
        for r in range(8, chunk, 8):
            folded = folded + acc[r:r + 8, :]
        out_ref[0, 0] += folded
    else:  # tiny inputs only (rows_p < 8)
        out_ref[0, 0, 0:chunk, :] += acc


# ----------------------------------------------------------------------------
# Ragged path: n % 128 != 0.  No padding pass; 3-D [B, C, n] blocks with the
# channel reduction across sublanes and in-kernel masking of the edge block.
# ----------------------------------------------------------------------------
def _stereo_loss_ragged_kernel(a_ref, b_ref, out_ref, *, n_valid, need_mask):
    j = pl.program_id(1)

    @pl.when(j == 0)
    def _():
        out_ref[...] = jnp.zeros_like(out_ref)

    a = a_ref[0].astype(jnp.float32)                # (C, tcols)
    b = b_ref[0].astype(jnp.float32)
    dot = jnp.sum(a * b, axis=0, keepdims=True)     # (1, tcols)
    sa = jnp.sum(a * a, axis=0, keepdims=True)
    sb = jnp.sum(b * b, axis=0, keepdims=True)
    inv = lax.rsqrt(jnp.maximum(sa * sb, jnp.float32(_EPS * _EPS)))
    loss = 0.5 - 0.5 * (dot * inv)                  # (1, tcols)
    if need_mask:
        tcols = loss.shape[1]
        col = j * tcols + lax.broadcasted_iota(jnp.int32, loss.shape, 1)
        loss = jnp.where(col < n_valid, loss, 0.0)
    out_ref[0] += loss                              # resident accumulator


def stereo_image_loss(a, b, *, weight: float = 1.0, tile_rows: int = 1024):
    """Pallas implementation of StereoImageLoss.forward (mask_key=None path).

    a, b: arrays with the channel (cosine-similarity) axis at dim=1, PyTorch
    NCHW / NCT convention. Returns a scalar float32 loss.
    """
    # TODO(synk): mask_key boolean-index path (data-dependent mean) not implemented;
    # only the default mask_key=None path is reproduced.  Weight decay is host-side
    # buffer state and is left to the caller.
    assert a.shape == b.shape
    assert a.ndim >= 2
    B, C = int(a.shape[0]), int(a.shape[1])
    n = 1
    for d in a.shape[2:]:
        n *= int(d)
    assert B > 0 and C > 0 and n > 0
    assert n < 2 ** 31, "per-channel spatial extent must fit int32 indexing"

    itemsize = max(jnp.dtype(a.dtype).itemsize, jnp.dtype(b.dtype).itemsize)
    vmem_limit = _pick_vmem_limit_bytes()
    budget = int(vmem_limit * 0.8)   # 2 streams x 2 pipeline buffers of inputs

    # Free reshape: [B, C, spatial...] -> [B, C, n]
    a3 = jnp.reshape(a, (B, C, n))
    b3 = jnp.reshape(b, (B, C, n))

    if n % 128 == 0:
        rows = n // 128

        # Split the row axis into P parallel slices when batch is small so the
        # "parallel" grid axes have >=2 units of work (v7x megacore).
        P = 1
        if B < 8:
            for cand in (8, 4, 2):
                if rows % cand == 0 and (rows // cand) >= 64:
                    P = cand
                    break
        rows_p = rows // P
        a5 = jnp.reshape(a3, (B, C, P, rows_p, 128))   # free reshape
        b5 = jnp.reshape(b3, (B, C, P, rows_p, 128))

        # Tile rows per grid step, capped so 2 inputs x 2 pipeline buffers of
        # (C, tr, 128) blocks stay inside the scoped-VMEM budget.
        tr_cap = max(8, budget // (4 * C * 128 * itemsize))
        if rows_p < 8:
            tr = rows_p                      # full-extent block (tiny inputs)
        else:
            tr = min(int(tile_rows), tr_cap, rows_p)
            tr = max(8, (tr // 8) * 8)       # sublane-aligned tile
        num_j = pl.cdiv(rows_p, tr)
        need_mask = (rows_p % tr) != 0       # partial edge block on the row axis

        if tr % 32 == 0:
            chunk = 32
        elif tr % 16 == 0:
            chunk = 16
        elif tr % 8 == 0:
            chunk = 8
        else:
            chunk = tr                       # only when rows_p < 8

        kernel = functools.partial(
            _stereo_loss_aligned_kernel,
            num_channels=C, rows_valid=rows_p, chunk=chunk, need_mask=need_mask)

        partials = pl.pallas_call(
            kernel,
            out_shape=jax.ShapeDtypeStruct((B, P, 8, 128), jnp.float32),
            grid_spec=pltpu.PrefetchScalarGridSpec(
                num_scalar_prefetch=0,
                grid=(B, P, num_j),
                in_specs=[
                    pl.BlockSpec((1, C, 1, tr, 128),
                                 lambda bb, p, j: (bb, 0, p, j, 0)),
                    pl.BlockSpec((1, C, 1, tr, 128),
                                 lambda bb, p, j: (bb, 0, p, j, 0)),
                ],
                out_specs=pl.BlockSpec((1, 1, 8, 128),
                                       lambda bb, p, j: (bb, p, 0, 0)),
            ),
            compiler_params=pltpu.CompilerParams(
                dimension_semantics=("parallel", "parallel", "arbitrary"),
                vmem_limit_bytes=vmem_limit,
            ),
        )(a5, b5)
        total = jnp.sum(partials)
    else:
        # Ragged spatial extent: no padding pass over HBM.
        tcols_cap = max(128, budget // (4 * C * itemsize))
        if n <= tcols_cap:
            tcols = n                         # full-extent block, single step
        else:
            tcols = max(128, (tcols_cap // 128) * 128)
        num_j = pl.cdiv(n, tcols)
        need_mask = (n % tcols) != 0

        kernel = functools.partial(
            _stereo_loss_ragged_kernel, n_valid=n, need_mask=need_mask)

        partials = pl.pallas_call(
            kernel,
            out_shape=jax.ShapeDtypeStruct((B, 1, tcols), jnp.float32),
            grid_spec=pltpu.PrefetchScalarGridSpec(
                num_scalar_prefetch=0,
                grid=(B, num_j),
                in_specs=[
                    pl.BlockSpec((1, C, tcols), lambda bb, j: (bb, 0, j)),
                    pl.BlockSpec((1, C, tcols), lambda bb, j: (bb, 0, j)),
                ],
                out_specs=pl.BlockSpec((1, 1, tcols), lambda bb, j: (bb, 0, 0)),
            ),
            compiler_params=pltpu.CompilerParams(
                dimension_semantics=("parallel", "arbitrary"),
                vmem_limit_bytes=vmem_limit,
            ),
        )(a3, b3)
        total = jnp.sum(partials)

    return (total * jnp.float32(float(weight) / float(B * n))).astype(jnp.float32)


def _reference(a, b, weight=1.0):
    a = a.astype(jnp.float32)
    b = b.astype(jnp.float32)
    dot = jnp.sum(a * b, axis=1)
    na = jnp.sqrt(jnp.sum(a * a, axis=1))
    nb = jnp.sqrt(jnp.sum(b * b, axis=1))
    cos = dot / jnp.maximum(na * nb, _EPS)
    return weight * jnp.mean(0.5 * (1.0 - cos))


if __name__ == "__main__":
    key = jax.random.PRNGKey(0)
    keys = jax.random.split(key, 8)

    # 1) Aligned NCHW f32, channel dim = 1 (cosine-similarity reduction axis).
    a = jax.random.normal(keys[0], (2, 4, 16, 16), dtype=jnp.float32)
    b = jax.random.normal(keys[1], (2, 4, 16, 16), dtype=jnp.float32)
    loss = stereo_image_loss(a, b, weight=1.0)
    jax.block_until_ready(loss)
    ref = _reference(a, b, weight=1.0)
    assert jnp.allclose(loss, ref, atol=1e-5, rtol=1e-5), (loss, ref)

    # 2) Ragged / non-128-aligned spatial extent -> no-pad 3-D path.
    a2 = jax.random.normal(keys[2], (2, 2, 6, 10), dtype=jnp.float32)
    b2 = jax.random.normal(keys[3], (2, 2, 6, 10), dtype=jnp.float32)
    loss2 = stereo_image_loss(a2, b2, weight=0.5)
    jax.block_until_ready(loss2)
    ref2 = _reference(a2, b2, weight=0.5)
    assert jnp.allclose(loss2, ref2, atol=1e-5, rtol=1e-5), (loss2, ref2)

    # 3) Partial edge block on the row axis (rows % tr != 0) with B=1.
    a3_ = jax.random.normal(keys[4], (1, 2, 40, 128), dtype=jnp.float32)
    b3_ = jax.random.normal(keys[5], (1, 2, 40, 128), dtype=jnp.float32)
    loss3 = stereo_image_loss(a3_, b3_, weight=1.0, tile_rows=16)
    jax.block_until_ready(loss3)
    ref3 = _reference(a3_, b3_, weight=1.0)
    assert jnp.allclose(loss3, ref3, atol=1e-5, rtol=1e-5), (loss3, ref3)

    # 4) bf16 stereo-audio layout (B, 2, T), exercises bf16 HBM path and the
    #    parallel row split for small batch.
    a4f = jax.random.normal(keys[6], (1, 2, 131072), dtype=jnp.float32)
    b4f = jax.random.normal(keys[7], (1, 2, 131072), dtype=jnp.float32)
    a4 = a4f.astype(jnp.bfloat16)
    b4 = b4f.astype(jnp.bfloat16)
    loss4 = stereo_image_loss(a4, b4, weight=1.0)
    jax.block_until_ready(loss4)
    ref4 = _reference(a4, b4, weight=1.0)
    assert jnp.allclose(loss4, ref4, atol=2e-3, rtol=2e-3), (loss4, ref4)

    print("KERNEL_OK")
</pallas_src>

<mosaic_0001>
module attributes {stable_mosaic.version = 11 : i64} {
  func.func @_stereo_loss_aligned_kernel(%arg0: i32, %arg1: i32, %arg2: i32, %arg3: memref<1x4x1x2x128xf32, #tpu.memory_space<vmem>>, %arg4: memref<1x4x1x2x128xf32, #tpu.memory_space<vmem>>, %arg5: memref<1x1x8x128xf32, #tpu.memory_space<vmem>>) attributes {dimension_semantics = [#tpu.dimension_semantics<parallel>, #tpu.dimension_semantics<parallel>, #tpu.dimension_semantics<arbitrary>], iteration_bounds = array<i64: 2, 1, 1>, scalar_prefetch = 0 : i64, scratch_operands = 0 : i64, tpu.core_type = #tpu.core_type<tc>, window_params = [{transform_indices = @transform_0, window_bounds = array<i64: 1, 4, 1, 2, 128>}, {transform_indices = @transform_1, window_bounds = array<i64: 1, 4, 1, 2, 128>}, {transform_indices = @transform_2, window_bounds = array<i64: 1, 1, 8, 128>}]} {
    %c0_i32 = arith.constant 0 : i32
    %0 = arith.cmpi eq, %arg2, %c0_i32 : i32
    %1 = arith.extui %0 : i1 to i32
    %c0_i32_0 = arith.constant 0 : i32
    %2 = arith.cmpi ne, %1, %c0_i32_0 : i32
    scf.if %2 {
      %cst_47 = arith.constant 0.000000e+00 : f32
      %55 = vector.broadcast %cst_47 : f32 to vector<1x1x8x128xf32>
      %c0_48 = arith.constant 0 : index
      %c0_49 = arith.constant 0 : index
      %c0_50 = arith.constant 0 : index
      %c0_51 = arith.constant 0 : index
      %56 = vector.load %arg5[%c0_48, %c0_49, %c0_50, %c0_51] : memref<1x1x8x128xf32, #tpu.memory_space<vmem>>, vector<1x1x8x128xf32>
      tpu.vector_store %arg5[%c0_48, %c0_49, %c0_50, %c0_51], %55 {strides = array<i32>} : memref<1x1x8x128xf32, #tpu.memory_space<vmem>>, vector<1x1x8x128xf32>,
    } else {
    }
    %c0 = arith.constant 0 : index
    %c0_1 = arith.constant 0 : index
    %c0_2 = arith.constant 0 : index
    %c0_3 = arith.constant 0 : index
    %c0_4 = arith.constant 0 : index
    %3 = vector.load %arg3[%c0, %c0_1, %c0_2, %c0_3, %c0_4] : memref<1x4x1x2x128xf32, #tpu.memory_space<vmem>>, vector<1x1x1x2x128xf32>
    %4 = vector.shape_cast %3 : vector<1x1x1x2x128xf32> to vector<2x128xf32>
    %c0_5 = arith.constant 0 : index
    %c0_6 = arith.constant 0 : index
    %c0_7 = arith.constant 0 : index
    %c0_8 = arith.constant 0 : index
    %c0_9 = arith.constant 0 : index
    %5 = vector.load %arg4[%c0_5, %c0_6, %c0_7, %c0_8, %c0_9] : memref<1x4x1x2x128xf32, #tpu.memory_space<vmem>>, vector<1x1x1x2x128xf32>
    %6 = vector.shape_cast %5 : vector<1x1x1x2x128xf32> to vector<2x128xf32>
    %7 = arith.mulf %4, %6 : vector<2x128xf32>
    %8 = arith.mulf %4, %4 : vector<2x128xf32>
    %9 = arith.mulf %6, %6 : vector<2x128xf32>
    %c0_10 = arith.constant 0 : index
    %c1 = arith.constant 1 : index
    %c0_11 = arith.constant 0 : index
    %c0_12 = arith.constant 0 : index
    %c0_13 = arith.constant 0 : index
    %10 = vector.load %arg3[%c0_10, %c1, %c0_11, %c0_12, %c0_13] : memref<1x4x1x2x128xf32, #tpu.memory_space<vmem>>, vector<1x1x1x2x128xf32>
    %11 = vector.shape_cast %10 : vector<1x1x1x2x128xf32> to vector<2x128xf32>
    %c0_14 = arith.constant 0 : index
    %c1_15 = arith.constant 1 : index
    %c0_16 = arith.constant 0 : index
    %c0_17 = arith.constant 0 : index
    %c0_18 = arith.constant 0 : index
    %12 = vector.load %arg4[%c0_14, %c1_15, %c0_16, %c0_17, %c0_18] : memref<1x4x1x2x128xf32, #tpu.memory_space<vmem>>, vector<1x1x1x2x128xf32>
    %13 = vector.shape_cast %12 : vector<1x1x1x2x128xf32> to vector<2x128xf32>
    %14 = arith.mulf %11, %13 : vector<2x128xf32>
    %15 = arith.addf %7, %14 : vector<2x128xf32>
    %16 = arith.mulf %11, %11 : vector<2x128xf32>
    %17 = arith.addf %8, %16 : vector<2x128xf32>
    %18 = arith.mulf %13, %13 : vector<2x128xf32>
    %19 = arith.addf %9, %18 : vector<2x128xf32>
    %c0_19 = arith.constant 0 : index
    %c2 = arith.constant 2 : index
    %c0_20 = arith.constant 0 : index
    %c0_21 = arith.constant 0 : index
    %c0_22 = arith.constant 0 : index
    %20 = vector.load %arg3[%c0_19, %c2, %c0_20, %c0_21, %c0_22] : memref<1x4x1x2x128xf32, #tpu.memory_space<vmem>>, vector<1x1x1x2x128xf32>
    %21 = vector.shape_cast %20 : vector<1x1x1x2x128xf32> to vector<2x128xf32>
    %c0_23 = arith.constant 0 : index
    %c2_24 = arith.constant 2 : index
    %c0_25 = arith.constant 0 : index
    %c0_26 = arith.constant 0 : index
    %c0_27 = arith.constant 0 : index
    %22 = vector.load %arg4[%c0_23, %c2_24, %c0_25, %c0_26, %c0_27] : memref<1x4x1x2x128xf32, #tpu.memory_space<vmem>>, vector<1x1x1x2x128xf32>
    %23 = vector.shape_cast %22 : vector<1x1x1x2x128xf32> to vector<2x128xf32>
    %24 = arith.mulf %21, %23 : vector<2x128xf32>
    %25 = arith.addf %15, %24 : vector<2x128xf32>
    %26 = arith.mulf %21, %21 : vector<2x128xf32>
    %27 = arith.addf %17, %26 : vector<2x128xf32>
    %28 = arith.mulf %23, %23 : vector<2x128xf32>
    %29 = arith.addf %19, %28 : vector<2x128xf32>
    %c0_28 = arith.constant 0 : index
    %c3 = arith.constant 3 : index
    %c0_29 = arith.constant 0 : index
    %c0_30 = arith.constant 0 : index
    %c0_31 = arith.constant 0 : index
    %30 = vector.load %arg3[%c0_28, %c3, %c0_29, %c0_30, %c0_31] : memref<1x4x1x2x128xf32, #tpu.memory_space<vmem>>, vector<1x1x1x2x128xf32>
    %31 = vector.shape_cast %30 : vector<1x1x1x2x128xf32> to vector<2x128xf32>
    %c0_32 = arith.constant 0 : index
    %c3_33 = arith.constant 3 : index
    %c0_34 = arith.constant 0 : index
    %c0_35 = arith.constant 0 : index
    %c0_36 = arith.constant 0 : index
    %32 = vector.load %arg4[%c0_32, %c3_33, %c0_34, %c0_35, %c0_36] : memref<1x4x1x2x128xf32, #tpu.memory_space<vmem>>, vector<1x1x1x2x128xf32>
    %33 = vector.shape_cast %32 : vector<1x1x1x2x128xf32> to vector<2x128xf32>
    %34 = arith.mulf %31, %33 : vector<2x128xf32>
    %35 = arith.addf %25, %34 : vector<2x128xf32>
    %36 = arith.mulf %31, %31 : vector<2x128xf32>
    %37 = arith.addf %27, %36 : vector<2x128xf32>
    %38 = arith.mulf %33, %33 : vector<2x128xf32>
    %39 = arith.addf %29, %38 : vector<2x128xf32>
    %40 = arith.mulf %37, %39 : vector<2x128xf32>
    %cst = arith.constant 1.000000e-16 : f32
    %41 = vector.broadcast %cst : f32 to vector<2x128xf32>
    %42 = arith.maximumf %40, %41 : vector<2x128xf32>
    %43 = math.rsqrt %42 : vector<2x128xf32>
    %44 = arith.mulf %35, %43 : vector<2x128xf32>
    %cst_37 = arith.constant 5.000000e-01 : f32
    %45 = vector.broadcast %cst_37 : f32 to vector<2x128xf32>
    %46 = arith.mulf %45, %44 : vector<2x128xf32>
    %cst_38 = arith.constant 5.000000e-01 : f32
    %47 = vector.broadcast %cst_38 : f32 to vector<2x128xf32>
    %48 = arith.subf %47, %46 : vector<2x128xf32>
    %c0_39 = arith.constant 0 : index
    %c0_40 = arith.constant 0 : index
    %c0_41 = arith.constant 0 : index
    %c0_42 = arith.constant 0 : index
    %49 = vector.load %arg5[%c0_39, %c0_40, %c0_41, %c0_42] : memref<1x1x8x128xf32, #tpu.memory_space<vmem>>, vector<1x1x2x128xf32>
    %50 = vector.shape_cast %49 : vector<1x1x2x128xf32> to vector<2x128xf32>
    %51 = arith.addf %50, %48 : vector<2x128xf32>
    %c0_43 = arith.constant 0 : index
    %c0_44 = arith.constant 0 : index
    %c0_45 = arith.constant 0 : index
    %c0_46 = arith.constant 0 : index
    %52 = vector.load %arg5[%c0_43, %c0_44, %c0_45, %c0_46] : memref<1x1x8x128xf32, #tpu.memory_space<vmem>>, vector<1x1x2x128xf32>
    %53 = vector.shape_cast %52 : vector<1x1x2x128xf32> to vector<2x128xf32>
    %54 = vector.shape_cast %51 : vector<2x128xf32> to vector<1x1x2x128xf32>
    tpu.vector_store %arg5[%c0_43, %c0_44, %c0_45, %c0_46], %54 {strides = array<i32>} : memref<1x1x8x128xf32, #tpu.memory_space<vmem>>, vector<1x1x2x128xf32>,
    return
  }
  func.func @transform_0(%arg0: i32, %arg1: i32, %arg2: i32) -> (i32, i32, i32, i32, i32) {
    %c0_i32 = arith.constant 0 : i32
    %c0_i32_0 = arith.constant 0 : i32
    %c0_i32_1 = arith.constant 0 : i32
    return %arg0, %c0_i32, %arg1, %arg2, %c0_i32_0 : i32, i32, i32, i32, i32
  }
  func.func @transform_1(%arg0: i32, %arg1: i32, %arg2: i32) -> (i32, i32, i32, i32, i32) {
    %c0_i32 = arith.constant 0 : i32
    %c0_i32_0 = arith.constant 0 : i32
    %c0_i32_1 = arith.constant 0 : i32
    return %arg0, %c0_i32, %arg1, %arg2, %c0_i32_0 : i32, i32, i32, i32, i32
  }
  func.func @transform_2(%arg0: i32, %arg1: i32, %arg2: i32) -> (i32, i32, i32, i32) {
    %c0_i32 = arith.constant 0 : i32
    %c0_i32_0 = arith.constant 0 : i32
    %c0_i32_1 = arith.constant 0 : i32
    return %arg0, %arg1, %c0_i32, %c0_i32_0 : i32, i32, i32, i32
  }
}

</mosaic_0001>

<bundles_post_ra>
// kernel: tpu_custom_call.1
= control target key start
LH: loop header
LB: loop body
LE: loop exit
PB: predicated region body
PF: predicated region fallthrough
CT: control target
= control target key end

     0   :  { %7 = vsyncpa [#allocation3], 0  ;;  %s850_s0 = inlined_call_operand.hbm [shape: f32[2,4,1,2,128], index: 0, kind: input, shape index: {}]   ;;  %s851_s1 = inlined_call_operand.hbm [shape: f32[2,4,1,2,128], index: 1, kind: input, shape index: {}]   ;;  %s852_s2 = inlined_call_operand.hbm [shape: f32[2,1,8,128], index: 2, kind: output, shape index: {}]  }
   0x1   :  { %9 = vsyncpa [#allocation3 + $0x1], 0 }
   0x2   :  { %10 = vsyncpa [#allocation6], 0 }
   0x3   :  { %12 = vsyncpa [#allocation6 + $0x1], 0 }
   0x4   :  { %13 = vsyncpa [#allocation4], 0 }
   0x5   :  { %15 = vsyncpa [#allocation4 + $0x1], 0  ;;  %s671_s9 = smov 0   ;;  %s673_s10 = smov 0  }
   0x6   :  { %s675_s11 = smov 0   ;;  %s677_s12 = smov 0  }
   0x7   :  { %s679_s13 = smov 0   ;;  %s681_s14 = smov 0  }
   0x8 LB: > { %s410_s15 = sadd.s32 4294967295, %s648_s14   ;;  %s411_s16 = sadd.s32 4294967294, %s648_s14   ;;  %s648_s14 = sphi %s681_s14, %s21_s14   ;;  %s644_s13 = sphi %s679_s13, %s864_s13   ;;  %s640_s12 = sphi %s677_s12, %s863_s12   ;;  %s636_s11 = sphi %s675_s11, %s862_s11   ;;  %s632_s10 = sphi %s673_s10, %s861_s10   ;;  %s628_s9 = sphi %s671_s9, %s860_s9  }
   0x9   : > { %s40_s17 = sadd.s32 1, %s644_s13  ;;  %s51_s18 = sadd.s32 1, %s636_s11 }
   0xa   : > { %p42_p0 = scmp.ge.s32.totalorder %s40_s17, 2  ;;  %p58_p1 = scmp.ne.s32.totalorder %s636_s11, %s632_s10 }
   0xb   : > { %p59_p2 = scmp.eq.s32.totalorder %s648_s14, 0  ;;  %p64_p3 = scmp.ne.s32.totalorder %s632_s10, %s628_s9 }
   0xc   : > { %s866_s17 = smov (%p42_p0, %s40_s17), 0  ;;  %p65_p5 = scmp.eq.s32.totalorder %s410_s15, 0 }
   0xd   : > { %p712_p4 = por %p59_p2, %p58_p1  ;;  %s44_s20 = ssub.s32 %s644_s13, %s866_s17 }
   0xe   : > { %p120_p6 = scmp.eq.s32.totalorder %s410_s15, 1  ;;  %p49_p7 = scmp.eq.s32.totalorder %s44_s20, 0 }
   0xf   : > { %p718_p8 = por %p65_p5, %p64_p3  ;;  %p126_p10 = scmp.eq.s32.totalorder %s411_s16, 1 }
  0x10   : > { %p722_p9 = por %p120_p6, %p58_p1  ;;  %p453_p13 = scmp.lt.s32.totalorder %s648_s14, 2 }
  0x11   : > { %s727_s23 = scalar_select %p49_p7, %s636_s11, %s51_s18  }
  0x12   : > { %p729_p11 = por %p126_p10, %p64_p3  ;;  %s736_s25 = sand.u32 1, %s636_s11  }
  0x13   : > { %s414_s26 = sshll.u32 %s736_s25, 3  ;;  %s434_s27 = sshll.u32 %s644_s13, 7 }
  0x14   : > { %s158_s30 = scalar_lea.hbm %s850_s0, %s434_s27  ;;  %s150_s3 = scalar_lea.vmem [#allocation2], %s414_s26 }
  0x15   : > { %s159_s4 = sshll.u32 %s150_s3, 4  ;;  %p749_p0 = pnand %p453_p13, %p712_p4  ;;  %s160_s4 = int_to_ptr.vmem [resolvable:$true] %s159_s4 }
  0x16   : > { %p420_p1 = scmp.ge.s32.totalorder %s648_s14, 1  ;;  %s147_s6 = scalar_lea.sflag [#allocation3], %s736_s25 }
  0x17   : > { %p510_p2 = pneg %p749_p0  ;;  %s521_s7 = scalar_lea.vmem %s160_s4, 128 }
  0x18   : > { %p522_p3 = scmp.ne.s32.totalorder %s160_s4, %s521_s7  ;;  %s650_s8 = smov [#allocation2]  }
  0x19   : > { %s526_s15 = sshll.u32 %s650_s8, 4  ;;  %s527_s15 = int_to_ptr.vmem [resolvable:$false] %s526_s15 }
  0x1a   : > { %p524_p5 = pnand %p522_p3, %p510_p2  ;;  %s528_s16 = scalar_lea.vmem %s527_s15, 256 }
  0x1b   : > { %p529_p4 = scmp.lt.s32.totalorder %s160_s4, %s527_s15  ;;  %p530_p7 = scmp.lt.s32.totalorder %s528_s16, %s521_s7 }
  0x1c   : > { %p525_p6 = pneg %p524_p5 }
  0x1d   : > { %p531_p10 = por %p530_p7, %p529_p4 }
  0x1f   : > { %p532_p13 = pnand %p531_p10, %p525_p6 }
  0x21   : > { %535 = shalt.err (!%p532_p13)
}
  0x22   : > { %s651_s18 = smov 32   ;;  %s652_s19 = smov 2  }
  0x23   : > { %445 = dma.hbm_to_vmem [thread:$0]  (!%p749_p0), %s158_s30, 128, %s160_s4, %s147_s6, %s651_s18, %s651_s18, %s652_s19  }
  0x24   : > { %p190_p3 = scmp.lt.s32.totalorder %s648_s14, 3  ;;  %s181_s29 = scalar_lea.hbm %s851_s1, %s434_s27 }
  0x25   : > { %s173_s7 = scalar_lea.vmem [#allocation5], %s414_s26  ;;  %s170_s15 = scalar_lea.sflag [#allocation6], %s736_s25 }
  0x26   : > { %p770_p5 = pnand %p420_p1, %p190_p3  ;;  %s182_s8 = sshll.u32 %s173_s7, 4  ;;  %s183_s8 = int_to_ptr.vmem [resolvable:$true] %s182_s8 }
  0x27   : > { %s549_s16 = scalar_lea.vmem %s183_s8, 128  ;;  %s653_s30 = smov [#allocation5]  }
  0x28   : > { %p550_p6 = scmp.ne.s32.totalorder %s183_s8, %s549_s16  ;;  %s554_s4 = sshll.u32 %s653_s30, 4  ;;  %s555_s4 = int_to_ptr.vmem [resolvable:$false] %s554_s4 }
  0x29   : > { %s556_s27 = scalar_lea.vmem %s555_s4, 256  ;;  %p557_p10 = scmp.lt.s32.totalorder %s183_s8, %s555_s4 }
  0x2a   : > { %p552_p4 = pnand %p550_p6, %p510_p2  ;;  %p558_p1 = scmp.lt.s32.totalorder %s556_s27, %s549_s16 }
  0x2c   : > { %p553_p7 = pneg %p552_p4  ;;  %p559_p13 = por %p558_p1, %p557_p10 }
  0x2e   : > { %p560_p3 = pnand %p559_p13, %p553_p7 }
  0x30   : > { %563 = shalt.err (!%p560_p3)
}
  0x31   : > { %448 = dma.hbm_to_vmem [thread:$0]  (!%p749_p0), %s181_s29, 128, %s183_s8, %s170_s15, %s651_s18, %s651_s18, %s652_s19  }
  0x32   : > { %194 = sbr.rel (%p770_p5) target bundleno = 107 (0x6b), region = 28  ;;  %s785_s25 = sand.u32 (!%p770_p5), 1, %s632_s10  }
  0x33   : > { %s421_s26 = sshll.u32 (!%p770_p5), %s785_s25, 3  ;;  %s197_s6 = scalar_lea.sflag (!%p770_p5), [#allocation3], %s785_s25 }
  0x34   : > { %s200_s20 = scalar_lea.vmem (!%p770_p5), [#allocation2], %s421_s26 }
  0x37   : > { %615 = dma.done.wait (%p718_p8), %s197_s6, 128  }
  0x38   : > { %617 = vsyncadd (%p718_p8), %s197_s6, 4294967168  ;;  %s206_s5 = scalar_lea.sflag [#allocation6], %s785_s25  ;;  %s209_s18 = scalar_lea.vmem [#allocation5], %s421_s26 }
  0x39   : > { %619 = dma.done.wait (%p718_p8), %s206_s5, 128  }
  0x3a   : > { %621 = vsyncadd (%p718_p8), %s206_s5, 4294967168  ;;  %s798_s19 = scalar_lea.vmem [#allocation7], %s421_s26  ;;  %v654_v0 = vmov 0.0   ;;  %v240_v1 = vld [vmem:[%s200_s20] sm:$0x3]  ;;  %s431_s28 = sshll.u32 %s640_s12, 7 }
  0x3b   : > { %239 = vst [vmem:[%s798_s19] sm:$0xff] %v654_v0  ;;  %v241_v2 = vld [vmem:[%s209_s18] sm:$0x3]  ;;  %v424_v3 = vld [vmem:[%s200_s20 + $0x2] sm:$0x3]  ;;  %v243_v4 = vmul.f32 %v240_v1, %v240_v1  ;;  %v425_v6 = vld [vmem:[%s209_s18 + $0x2] sm:$0x3]  ;;  %s297_s7 = scalar_lea.hbm %s852_s2, %s431_s28 }
  0x3c   : > { %v244_v5 = vmul.f32 %v241_v2, %v241_v2  ;;  %v251_v7 = vmul.f32 %v424_v3, %v424_v3  ;;  %v426_v8 = vld [vmem:[%s200_s20 + $0x4] sm:$0x3]  ;;  %v427_v9 = vld [vmem:[%s209_s18 + $0x4] sm:$0x3]  ;;  %v253_v10 = vmul.f32 %v425_v6, %v425_v6  ;;  %v428_v12 = vld [vmem:[%s200_s20 + $0x6] sm:$0x3]  ;;  %v242_v24 = vmul.f32 %v241_v2, %v240_v1 }
  0x3d   : > { %v261_v11 = vmul.f32 %v426_v8, %v426_v8  ;;  %v429_v13 = vld [vmem:[%s209_s18 + $0x6] sm:$0x3]  ;;  %v263_v15 = vmul.f32 %v427_v9, %v427_v9  ;;  %v271_v16 = vmul.f32 %v428_v12, %v428_v12  ;;  %v249_v25 = vmul.f32 %v425_v6, %v424_v3  ;;  %s299_s21 = sshll.u32 %s798_s19, 4  ;;  %s285_s8 = scalar_lea.sflag [#allocation4], %s785_s25  ;;  %s804_s21 = int_to_ptr.vmem [resolvable:$true] %s299_s21 }
  0x3e   : > { %v252_v14 = vadd.f32 %v251_v7, %v243_v4  ;;  %v254_v17 = vadd.f32 %v253_v10, %v244_v5  ;;  %v273_v18 = vmul.f32 %v429_v13, %v429_v13  ;;  %v259_v28 = vmul.f32 %v427_v9, %v426_v8  ;;  %s564_s15 = scalar_lea.vmem %s804_s21, 128  ;;  %s655_s16 = smov [#allocation7]  }
  0x3f   : > { %v250_v27 = vadd.f32 %v249_v25, %v242_v24  ;;  %v269_v30 = vmul.f32 %v429_v13, %v428_v12  ;;  %p565_p8 = scmp.ne.s32.totalorder %s804_s21, %s564_s15  ;;  %s568_s12 = sshll.u32 %s655_s16, 4  ;;  %s569_s12 = int_to_ptr.vmem [resolvable:$false] %s568_s12 }
  0x40   : > { %v262_v19 = vadd.f32 %v261_v11, %v252_v14  ;;  %v264_v20 = vadd.f32 %v263_v15, %v254_v17  ;;  %s570_s30 = scalar_lea.vmem %s569_s12, 256  ;;  %p571_p5 = scmp.lt.s32.totalorder %s804_s21, %s569_s12 }
  0x41   : > { %v260_v29 = vadd.f32 %v259_v28, %v250_v27  ;;  %p566_p0 = pnand %p565_p8, %p722_p9  ;;  %p572_p6 = scmp.lt.s32.totalorder %s570_s30, %s564_s15 }
  0x42   : > { %v272_v21 = vadd.f32 %v271_v16, %v262_v19  ;;  %v274_v22 = vadd.f32 %v273_v18, %v264_v20  ;;  %v281_v35 = vld [vmem:[%s798_s19] sm:$0x3] }
  0x43   : > { %v270_v31 = vadd.f32 %v269_v30, %v260_v29  ;;  %p567_p2 = pneg %p566_p0  ;;  %p573_p4 = por %p572_p6, %p571_p5 }
  0x44   : > { %v275_v23 = vmul.f32 %v274_v22, %v272_v21 }
  0x45   : > { %p574_p7 = pnand %p573_p4, %p567_p2 }
  0x46   : > { %v276_v26 = vmax.f32 %v275_v23, 1e-16 }
  0x48   : > { %506 = vrsqrt.f32 %v276_v26 }
  0x55   : > { %v507_v32 = vpop.eup %506 }
  0x56   : > { %v278_v33 = vmul.f32 %v507_v32, %v270_v31 }
  0x58   : > { %v279_v34 = vmul.f32 0.5, %v278_v33 }
  0x5a   : > { %v280_v36 = vsub.f32 0.5, %v279_v34 }
  0x5c   : > { %v282_v37 = vadd.f32 %v281_v35, %v280_v36 }
  0x5e   : > { %283 = vst [vmem:[%s798_s19] sm:$0x3] %v282_v37 }
  0x5f   : > { %577 = shalt.err (!%p574_p7)
}
  0x60   : > { %s578_s4 = scalar_lea.hbm %s297_s7, 128  ;;  %s582_s26 = scalar_lea.hbm %s852_s2, 256 }
  0x61   : > { %p579_p10 = scmp.ne.s32.totalorder %s297_s7, %s578_s4  ;;  %p583_p3 = scmp.lt.s32.totalorder %s297_s7, %s852_s2 }
  0x62   : > { %p584_p8 = scmp.lt.s32.totalorder %s582_s26, %s578_s4 }
  0x63   : > { %p580_p1 = pnand %p579_p10, %p722_p9 }
  0x64   : > { %p585_p0 = por %p584_p8, %p583_p3 }
  0x65   : > { %p581_p13 = pneg %p580_p1 }
  0x67   : > { %p586_p12 = pnand %p585_p0, %p581_p13 }
  0x69   : > { %589 = shalt.err (!%p586_p12)
}
  0x6a   : > { %440 = dma.vmem_to_hbm [thread:$0]  (%p722_p9), %s804_s21, 128, %s297_s7, %s285_s8  }
  0x6b PF: > { %s311_s5 = sand.u32 1, %s628_s9   ;;  %p859_p2 = scmp.ge.s32.totalorder %s648_s14, 2 }
  0x6c   : > { %s312_s18 = scalar_lea.sflag [#allocation4], %s311_s5 }
  0x6d   : > { %p450_p5 = pnand %p859_p2, %p729_p11 }
  0x6f   : > { %p451_p6 = pneg %p450_p5 }
  0x71   : > { %623 = dma.done.wait (%p451_p6), %s312_s18, 128  }
  0x72   : > { %625 = vsyncadd (%p451_p6), %s312_s18, 4294967168  ;;  %s21_s14 = sadd.s32 1, %s648_s14   ;;  %s860_s9 = smov %s632_s10 }
  0x73   : > { %p18_p4 = scmp.ge.s32.totalorder %s21_s14, 4   ;;  %s861_s10 = smov %s636_s11 }
  0x74   : > { %s862_s11 = smov %s727_s23  ;;  %s863_s12 = smov %s644_s13 }
  0x75   : > { %s864_s13 = smov %s866_s17  ;;  %20 = sbr.rel (!%p18_p4) target bundleno = 8 (0x8), region = 96 }
  0x7a   :  { %317 = vsyncpa [#allocation3], 1 }
  0x7b   :  { %319 = vsyncpa [#allocation3 + $0x1], 1 }
  0x7c   :  { %320 = vsyncpa [#allocation6], 1 }
  0x7d   :  { %322 = vsyncpa [#allocation6 + $0x1], 1 }
  0x7e   :  { %323 = vsyncpa [#allocation4], 1 }
  0x7f   :  { %325 = vsyncpa [#allocation4 + $0x1], 1 }

</bundles_post_ra>
